<compile_context>
chip_gen: v7x
topology: tpu7x:2x2x1
jax: 0.10.0
libtpu: 0.0.40
codegen_flags: <defaults>
</compile_context>

<pallas_src>
import jax
import jax.numpy as jnp
from jax.experimental import pallas as pl
from jax.experimental.pallas import tpu as pltpu


def _onehot_gather_kernel(idx_ref, x_ref, o_ref):
    # idx_ref: VMEM (B_BLK, num_keep, 1) int32  kept-patch indices
    # x_ref:   VMEM (B_BLK, n, d)               full patch slab for this block
    # o_ref:   VMEM (B_BLK, num_keep, d)        gathered output block
    b_blk, num_keep, _ = idx_ref.shape
    n = x_ref.shape[1]

    idx = idx_ref[...]                                        # (B_BLK, nk, 1)
    iota = jax.lax.broadcasted_iota(jnp.int32, (b_blk, num_keep, n), 2)
    onehot = (idx == iota).astype(x_ref.dtype)                # (B_BLK, nk, n)

    # Batched 0/1 MXU matmul gather; f32 accumulation keeps it bit-exact for
    # f32/bf16 inputs.  Produces one lane-dense full-block store.
    gathered = jnp.einsum(
        "bkn,bnd->bkd", onehot, x_ref[...],
        preferred_element_type=jnp.float32)
    o_ref[...] = gathered.astype(o_ref.dtype)


def _keep_indices(key, b, n, num_keep):
    # Mirrors torch.randn(b, n).topk(num_keep, dim=-1).indices (semantically;
    # RNG stream / tie-breaking differ from torch, which is fine for dropout).
    scores = jax.random.normal(key, (b, n), dtype=jnp.float32)
    _, idx = jax.lax.top_k(scores, num_keep)
    return idx.astype(jnp.int32)


def _pick_batch_block(b, n, num_keep, d, itemsize, budget_bytes=8 << 20):
    # VMEM bytes per batch element: input slab + output slab + one-hot temp +
    # indices; the pipeline double-buffers the in/out blocks (factor 2 below
    # is conservative).  Largest divisor of b that fits the budget.
    per_b = (n * d + num_keep * d + num_keep * n) * itemsize + num_keep * 4
    max_blk = max(1, budget_bytes // (2 * per_b))
    blk = 1
    for cand in range(1, b + 1):
        if b % cand == 0 and cand <= max_blk:
            blk = cand
    return blk


def patch_dropout(x, prob, key, training=True):
    """Pallas implementation of PatchDropout.forward."""
    assert 0.0 <= prob < 1.0
    if not training or prob == 0.0:
        return x

    b, n, d = x.shape
    num_keep = max(1, int(n * (1 - prob)))
    itemsize = jnp.dtype(x.dtype).itemsize

    idx = _keep_indices(key, b, n, num_keep)      # (b, num_keep) int32
    idx3 = idx[:, :, None]                        # (b, num_keep, 1)

    b_blk = _pick_batch_block(b, n, num_keep, d, itemsize)
    grid = (b // b_blk,)

    # TODO(synk): for very large n*d (per-block slab > ~8 MiB) additionally
    # split d onto a second grid axis (d_blk multiple of 128) so the tiling
    # also fits v7x's 32 MiB scoped / 64 MiB physical VMEM.
    grid_spec = pltpu.PrefetchScalarGridSpec(
        num_scalar_prefetch=0,
        grid=grid,
        in_specs=[
            # Per-step kept-index block (tiny, lives in VMEM for the one-hot).
            pl.BlockSpec((b_blk, num_keep, 1), lambda bi: (bi, 0, 0)),
            # Whole patch slab for B_BLK batch elements: one big contiguous DMA.
            pl.BlockSpec((b_blk, n, d), lambda bi: (bi, 0, 0)),
        ],
        out_specs=pl.BlockSpec((b_blk, num_keep, d), lambda bi: (bi, 0, 0)),
    )

    cost = pl.CostEstimate(
        flops=2 * b * num_keep * n * d,
        transcendentals=0,
        bytes_accessed=(b * n * d + b * num_keep * d) * itemsize
        + b * num_keep * 4,
    )

    out = pl.pallas_call(
        _onehot_gather_kernel,
        out_shape=jax.ShapeDtypeStruct((b, num_keep, d), x.dtype),
        grid_spec=grid_spec,
        compiler_params=pltpu.CompilerParams(
            dimension_semantics=("parallel",)),
        cost_estimate=cost,
    )(idx3, x)
    return out


if __name__ == "__main__":
    key = jax.random.PRNGKey(0)
    k_x, k_drop = jax.random.split(key)

    B, N, D = 8, 16, 128
    prob = 0.25  # keeps max(1, int(16 * 0.75)) = 12 patches per batch element
    num_keep = max(1, int(N * (1 - prob)))

    x = jax.random.normal(k_x, (B, N, D), dtype=jnp.float32)

    out = patch_dropout(x, prob, k_drop, training=True)
    out = jax.block_until_ready(out)

    # Reference: plain-JAX fancy-index gather with the same kept indices
    # (same key / same op as inside patch_dropout -> identical indices).
    kept_idx = _keep_indices(k_drop, B, N, num_keep)
    ref = x[jnp.arange(B)[:, None], kept_idx]
    assert out.shape == (B, num_keep, D)
    assert out.dtype == x.dtype
    assert jnp.allclose(out, ref), "Pallas gather mismatch vs reference"

    # Eval / prob == 0 paths are identity with the same return type.
    assert patch_dropout(x, 0.0, k_drop, training=True) is x
    assert patch_dropout(x, prob, k_drop, training=False) is x

    print("KERNEL_OK")
</pallas_src>

<mosaic_0001>
module attributes {stable_mosaic.version = 11 : i64} {
  func.func @_onehot_gather_kernel(%arg0: i32, %arg1: memref<8x12x1xi32, #tpu.memory_space<vmem>>, %arg2: memref<8x16x128xf32, #tpu.memory_space<vmem>>, %arg3: memref<8x12x128xf32, #tpu.memory_space<vmem>>) attributes {dimension_semantics = [#tpu.dimension_semantics<parallel>], iteration_bounds = array<i64: 1>, scalar_prefetch = 0 : i64, scratch_operands = 0 : i64, tpu.core_type = #tpu.core_type<tc>, window_params = [{transform_indices = @transform_0, window_bounds = array<i64: 8, 12, 1>}, {transform_indices = @transform_1, window_bounds = array<i64: 8, 16, 128>}, {transform_indices = @transform_2, window_bounds = array<i64: 8, 12, 128>}]} {
    %c0 = arith.constant 0 : index
    %c0_0 = arith.constant 0 : index
    %c0_1 = arith.constant 0 : index
    %0 = vector.load %arg1[%c0, %c0_0, %c0_1] : memref<8x12x1xi32, #tpu.memory_space<vmem>>, vector<8x12x1xi32>
    %1 = tpu.iota {dimensions = array<i32: 2>} : vector<8x12x16xi32>
    %2 = vector.broadcast %0 : vector<8x12x1xi32> to vector<8x12x16xi32>
    %3 = arith.cmpi eq, %2, %1 : vector<8x12x16xi32>
    %4 = arith.extui %3 : vector<8x12x16xi1> to vector<8x12x16xi32>
    %5 = arith.sitofp %4 : vector<8x12x16xi32> to vector<8x12x16xf32>
    %c0_2 = arith.constant 0 : index
    %c0_3 = arith.constant 0 : index
    %c0_4 = arith.constant 0 : index
    %6 = vector.load %arg2[%c0_2, %c0_3, %c0_4] : memref<8x16x128xf32, #tpu.memory_space<vmem>>, vector<8x16x128xf32>
    "tpu.trace_start"() <{level = 10 : i32, message = "bkn,bnd->bkd"}> : () -> ()
    %cst = arith.constant dense<0.000000e+00> : vector<8x12x128xf32>
    %7 = tpu.matmul %5, %6, %cst {dimension_numbers = #tpu.dot_dimension_numbers<[2], [1], [1], [2], [0, 0, 0, 1, 1, 2], [0], [0]>} : vector<8x12x16xf32>, vector<8x16x128xf32>, vector<8x12x128xf32> -> vector<8x12x128xf32>
    "tpu.trace_stop"() : () -> ()
    %c0_5 = arith.constant 0 : index
    %c0_6 = arith.constant 0 : index
    %c0_7 = arith.constant 0 : index
    %8 = vector.load %arg3[%c0_5, %c0_6, %c0_7] : memref<8x12x128xf32, #tpu.memory_space<vmem>>, vector<8x12x128xf32>
    tpu.vector_store %arg3[%c0_5, %c0_6, %c0_7], %7 {strides = array<i32>} : memref<8x12x128xf32, #tpu.memory_space<vmem>>, vector<8x12x128xf32>,
    return
  }
  func.func @transform_0(%arg0: i32) -> (i32, i32, i32) {
    %c0_i32 = arith.constant 0 : i32
    %c0_i32_0 = arith.constant 0 : i32
    %c0_i32_1 = arith.constant 0 : i32
    return %arg0, %c0_i32, %c0_i32_0 : i32, i32, i32
  }
  func.func @transform_1(%arg0: i32) -> (i32, i32, i32) {
    %c0_i32 = arith.constant 0 : i32
    %c0_i32_0 = arith.constant 0 : i32
    %c0_i32_1 = arith.constant 0 : i32
    return %arg0, %c0_i32, %c0_i32_0 : i32, i32, i32
  }
  func.func @transform_2(%arg0: i32) -> (i32, i32, i32) {
    %c0_i32 = arith.constant 0 : i32
    %c0_i32_0 = arith.constant 0 : i32
    %c0_i32_1 = arith.constant 0 : i32
    return %arg0, %c0_i32, %c0_i32_0 : i32, i32, i32
  }
}

</mosaic_0001>

<bundles_post_ra>
// kernel: tpu_custom_call.1
= control target key start
LH: loop header
LB: loop body
LE: loop exit
PB: predicated region body
PF: predicated region fallthrough
CT: control target
= control target key end

     0   :  { %v966_v0 = vmov 0   ;;  %v27_v29 = vlaneseq  ;;  %vm141_vm0 = vcmask 130048   ;;  %v967_v35 = vmov 0.0   ;;  %s1177_s0 = inlined_call_operand.vmem [shape: s32[8,12,1], index: 0, kind: input, shape index: {}]   ;;  %s1178_s1 = inlined_call_operand.vmem [shape: f32[8,16,128], index: 1, kind: input, shape index: {}]   ;;  %s1179_s2 = inlined_call_operand.vmem [shape: f32[8,12,128], index: 2, kind: output, shape index: {}]  }
   0x1   :  { %965 = vset.pattern.permute.xlu1 %v966_v0  ;;  %964 = vset.pattern.permute.xlu0 %v966_v0  ;;  %v12_v1 = vld [vmem:[%s1177_s0 + $0x8] sm:$0xf]  ;;  %v11_v2 = vld [vmem:[%s1177_s0] sm:$0xff]  ;;  %v14_v3 = vld [vmem:[%s1177_s0 + $0x18] sm:$0xf] }
   0x2   :  { %33 = vperm.xlu1 %965, %v12_v1   ;;  %30 = vperm.xlu0 %964, %v11_v2   ;;  %v13_v4 = vld [vmem:[%s1177_s0 + $0x10] sm:$0xff]  ;;  %v125_v6 = vld [vmem:[%s1178_s1] sm:$0xff]  ;;  %v126_v7 = vld [vmem:[%s1178_s1 + $0x8] sm:$0xff]  ;;  %v1055_v30 = vand.u32 127, %v27_v29 }
   0x3   :  { %v17_v5 = vld [vmem:[%s1177_s0 + $0x30] sm:$0xff]  ;;  %v15_v8 = vld [vmem:[%s1177_s0 + $0x20] sm:$0xff]  ;;  %v930_v9 = vpack.c.bf16 %v126_v7, %v125_v6  ;;  %v128_v11 = vld [vmem:[%s1178_s1 + $0x18] sm:$0xff] }
   0x4   :  { %v127_v10 = vld [vmem:[%s1178_s1 + $0x10] sm:$0xff]  ;;  %v129_v13 = vld [vmem:[%s1178_s1 + $0x20] sm:$0xff]  ;;  %v130_v14 = vld [vmem:[%s1178_s1 + $0x28] sm:$0xff] }
   0x5   :  { %v934_v12 = vpack.c.bf16 %v128_v11, %v127_v10  ;;  %931 = vmatprep.subr.bf16.mxu0 %v930_v9  ;;  %v131_v15 = vld [vmem:[%s1178_s1 + $0x30] sm:$0xff]  ;;  %v938_v16 = vpack.c.bf16 %v130_v14, %v129_v13  ;;  %v132_v17 = vld [vmem:[%s1178_s1 + $0x38] sm:$0xff]  ;;  %v16_v19 = vld [vmem:[%s1177_s0 + $0x28] sm:$0xf] }
   0x6   :  { %39 = vperm.xlu1 %965, %v14_v3   ;;  %36 = vperm.xlu0 %964, %v13_v4   ;;  %v18_v18 = vld [vmem:[%s1177_s0 + $0x38] sm:$0xf]  ;;  %v942_v20 = vpack.c.bf16 %v132_v17, %v131_v15  ;;  %v21_v21 = vld [vmem:[%s1177_s0 + $0x50] sm:$0xff]  ;;  %v19_v22 = vld [vmem:[%s1177_s0 + $0x40] sm:$0xff] }
   0x7   :  { %933 = vmatpush3.bf16.msra.mxu0 %v930_v9  ;;  %935 = vmatprep.subr.bf16.mxu1 %v934_v12  ;;  %v22_v23 = vld [vmem:[%s1177_s0 + $0x58] sm:$0xf]  ;;  %v20_v24 = vld [vmem:[%s1177_s0 + $0x48] sm:$0xf]  ;;  %v25_v25 = vld [vmem:[%s1177_s0 + $0x70] sm:$0xff] }
   0x8   :  { %937 = vmatpush3.bf16.msra.mxu1 %v934_v12  ;;  %939 = vmatprep.subr.bf16.mxu0 %v938_v16  ;;  %v23_v26 = vld [vmem:[%s1177_s0 + $0x60] sm:$0xff]  ;;  %v26_v27 = vld [vmem:[%s1177_s0 + $0x78] sm:$0xf]  ;;  %v24_v28 = vld [vmem:[%s1177_s0 + $0x68] sm:$0xf] }
   0x9   :  { %943 = vmatprep.subr.bf16.mxu1 %v942_v20  ;;  %v133_v31 = vld [vmem:[%s1178_s1 + $0x40] sm:$0xff]  ;;  %v134_v32 = vld [vmem:[%s1178_s1 + $0x48] sm:$0xff]  ;;  %v135_v39 = vld [vmem:[%s1178_s1 + $0x50] sm:$0xff] }
   0xa   :  { %48 = vperm.xlu1 %965, %v17_v5   ;;  %42 = vperm.xlu0 %964, %v15_v8   ;;  %v946_v38 = vpack.c.bf16 %v134_v32, %v133_v31  ;;  %v136_v40 = vld [vmem:[%s1178_s1 + $0x58] sm:$0xff]  ;;  %v137_v48 = vld [vmem:[%s1178_s1 + $0x60] sm:$0xff]  ;;  %v138_v51 = vld [vmem:[%s1178_s1 + $0x68] sm:$0xff] }
   0xb   :  { %v950_v45 = vpack.c.bf16 %v136_v40, %v135_v39  ;;  %v139_v52 = vld [vmem:[%s1178_s1 + $0x70] sm:$0xff]  ;;  %v140_v53 = vld [vmem:[%s1178_s1 + $0x78] sm:$0xff]  ;;  %v954_v56 = vpack.c.bf16 %v138_v51, %v137_v48 }
   0xc   :  { %v958_v57 = vpack.c.bf16 %v140_v53, %v139_v52 }
   0xe   :  { %51 = vperm.xlu1 %965, %v18_v18   ;;  %45 = vperm.xlu0 %964, %v16_v19  }
  0x12   :  { %60 = vperm.xlu1 %965, %v21_v21   ;;  %54 = vperm.xlu0 %964, %v19_v22  }
  0x16   :  { %63 = vperm.xlu1 %965, %v22_v23   ;;  %57 = vperm.xlu0 %964, %v20_v24  }
  0x1a   :  { %72 = vperm.xlu1 %965, %v25_v25   ;;  %66 = vperm.xlu0 %964, %v23_v26  }
  0x1e   :  { %75 = vperm.xlu1 %965, %v26_v27   ;;  %69 = vperm.xlu0 %964, %v24_v28  }
  0x81   :  { %v34_v33 = vpop.permute.xlu1 %33  ;;  %v31_v34 = vpop.permute.xlu0 %30 }
  0x82   :  { %vm78_vm1 = vcmp.eq.s32.totalorder %v34_v33, %v1055_v30  ;;  %vm77_vm2 = vcmp.eq.s32.totalorder %v31_v34, %v1055_v30 }
  0x83   :  { %v811_v36 = vsel %vm78_vm1, 1.0, %v967_v35  ;;  %v810_v37 = vsel %vm77_vm2, 1.0, %v967_v35 }
  0x84   :  { %878 = vmatprep.mubr.msk.f32.mxu0 %vm141_vm0, %v810_v37 }
  0x85   :  { %v40_v41 = vpop.permute.xlu1 %39  ;;  %879 = vmatmul.mubr.msk.f32.vlgmr.msra.gmra.mrb[0].mxu0 %vm141_vm0, %v811_v36  ;;  %v37_v42 = vpop.permute.xlu0 %36 }
  0x86   :  { %vm80_vm3 = vcmp.eq.s32.totalorder %v40_v41, %v1055_v30  ;;  %vm79_vm4 = vcmp.eq.s32.totalorder %v37_v42, %v1055_v30  ;;  %941 = vmatpush3.bf16.msra.mxu0 %v938_v16 }
  0x87   :  { %v813_v43 = vsel %vm80_vm3, 1.0, %v967_v35  ;;  %v812_v44 = vsel %vm79_vm4, 1.0, %v967_v35  ;;  %947 = vmatprep.subr.bf16.mxu0 %v946_v38 }
  0x88   :  { %885 = vmatprep.mubr.msk.f32.mxu1 %vm141_vm0, %v812_v44 }
  0x89   :  { %v49_v46 = vpop.permute.xlu1 %48  ;;  %886 = vmatmul.mubr.msk.f32.vlgmr.msra.gmra.mrb[0].mxu1 %vm141_vm0, %v813_v43  ;;  %v43_v47 = vpop.permute.xlu0 %42 }
  0x8a   :  { %vm83_vm5 = vcmp.eq.s32.totalorder %v49_v46, %v1055_v30  ;;  %vm81_vm6 = vcmp.eq.s32.totalorder %v43_v47, %v1055_v30  ;;  %945 = vmatpush3.bf16.msra.mxu1 %v942_v20 }
  0x8b   :  { %v816_v49 = vsel %vm83_vm5, 1.0, %v967_v35  ;;  %v814_v50 = vsel %vm81_vm6, 1.0, %v967_v35  ;;  %951 = vmatprep.subr.bf16.mxu1 %v950_v45 }
  0x8c   :  { %892 = vmatprep.mubr.msk.f32.mxu0 %vm141_vm0, %v814_v50  ;;  %899 = vmatprep.mubr.msk.f32.mxu1 %vm141_vm0, %v816_v49 }
  0x8d   :  { %v52_v54 = vpop.permute.xlu1 %51  ;;  %v46_v55 = vpop.permute.xlu0 %45 }
  0x8e   :  { %vm84_vm7 = vcmp.eq.s32.totalorder %v52_v54, %v1055_v30  ;;  %vm82_vm8 = vcmp.eq.s32.totalorder %v46_v55, %v1055_v30 }
  0x8f   :  { %v817_v58 = vsel %vm84_vm7, 1.0, %v967_v35  ;;  %v815_v59 = vsel %vm82_vm8, 1.0, %v967_v35 }
  0x90   :  { %893 = vmatmul.mubr.msk.f32.vlgmr.msra.gmra.mrb[2].mxu0 %vm141_vm0, %v815_v59  ;;  %900 = vmatmul.mubr.msk.f32.vlgmr.msra.gmra.mrb[2].mxu1 %vm141_vm0, %v817_v58 }
  0x91   :  { %v61_v60 = vpop.permute.xlu1 %60  ;;  %v55_v61 = vpop.permute.xlu0 %54  ;;  %949 = vmatpush3.bf16.msra.mxu0 %v946_v38  ;;  %953 = vmatpush3.bf16.msra.mxu1 %v950_v45 }
  0x92   :  { %vm87_vm9 = vcmp.eq.s32.totalorder %v61_v60, %v1055_v30  ;;  %vm85_vm10 = vcmp.eq.s32.totalorder %v55_v61, %v1055_v30  ;;  %955 = vmatprep.subr.bf16.mxu0 %v954_v56  ;;  %959 = vmatprep.subr.bf16.mxu1 %v958_v57 }
  0x93   :  { %v820_v62 = vsel %vm87_vm9, 1.0, %v967_v35  ;;  %v818_v63 = vsel %vm85_vm10, 1.0, %v967_v35 }
  0x94   :  { %906 = vmatprep.mubr.msk.f32.mxu0 %vm141_vm0, %v818_v63  ;;  %913 = vmatprep.mubr.msk.f32.mxu1 %vm141_vm0, %v820_v62 }
  0x95   :  { %v64_v0 = vpop.permute.xlu1 %63  ;;  %v58_v1 = vpop.permute.xlu0 %57 }
  0x96   :  { %vm88_vm11 = vcmp.eq.s32.totalorder %v64_v0, %v1055_v30  ;;  %vm86_vm12 = vcmp.eq.s32.totalorder %v58_v1, %v1055_v30 }
  0x97   :  { %v821_v2 = vsel %vm88_vm11, 1.0, %v967_v35  ;;  %v819_v3 = vsel %vm86_vm12, 1.0, %v967_v35 }
  0x98   :  { %907 = vmatmul.mubr.msk.f32.vlgmr.msra.gmra.mrb[4].mxu0 %vm141_vm0, %v819_v3  ;;  %914 = vmatmul.mubr.msk.f32.vlgmr.msra.gmra.mrb[4].mxu1 %vm141_vm0, %v821_v2 }
  0x99   :  { %v73_v4 = vpop.permute.xlu1 %72  ;;  %v67_v5 = vpop.permute.xlu0 %66  ;;  %957 = vmatpush3.bf16.msra.mxu0 %v954_v56  ;;  %961 = vmatpush3.bf16.msra.mxu1 %v958_v57 }
  0x9a   :  { %vm91_vm13 = vcmp.eq.s32.totalorder %v73_v4, %v1055_v30  ;;  %vm89_vm14 = vcmp.eq.s32.totalorder %v67_v5, %v1055_v30 }
  0x9b   :  { %v824_v6 = vsel %vm91_vm13, 1.0, %v967_v35  ;;  %v822_v7 = vsel %vm89_vm14, 1.0, %v967_v35 }
  0x9c   :  { %920 = vmatprep.mubr.msk.f32.mxu0 %vm141_vm0, %v822_v7  ;;  %927 = vmatprep.mubr.msk.f32.mxu1 %vm141_vm0, %v824_v6 }
  0x9d   :  { %v76_v8 = vpop.permute.xlu1 %75  ;;  %v70_v9 = vpop.permute.xlu0 %69 }
  0x9e   :  { %vm92_vm15 = vcmp.eq.s32.totalorder %v76_v8, %v1055_v30  ;;  %vm90_vm1 = vcmp.eq.s32.totalorder %v70_v9, %v1055_v30 }
  0x9f   :  { %v825_v10 = vsel %vm92_vm15, 1.0, %v967_v35  ;;  %v823_v11 = vsel %vm90_vm1, 1.0, %v967_v35 }
  0xa0   :  { %921 = vmatmul.mubr.msk.f32.vlgmr.msra.gmra.mrb[6].mxu0 %vm141_vm0, %v823_v11  ;;  %928 = vmatmul.mubr.msk.f32.vlgmr.msra.gmra.mrb[6].mxu1 %vm141_vm0, %v825_v10 }
 0x158   :  { %v880_v12 = vpop.f32.mrb[0].mxu0 }
 0x159   :  { %791 = vst [vmem:[%s1179_s2 + $0x8] sm:$0xf] %v880_v12  ;;  %v214_v13 = vpop.f32.mrb[1].mxu0 }
 0x15a   :  { %790 = vst [vmem:[%s1179_s2] sm:$0xff] %v214_v13 }
 0x15c   :  { %v887_v14 = vpop.f32.mrb[0].mxu1 }
 0x15d   :  { %793 = vst [vmem:[%s1179_s2 + $0x18] sm:$0xf] %v887_v14  ;;  %v295_v15 = vpop.f32.mrb[1].mxu1 }
 0x15e   :  { %792 = vst [vmem:[%s1179_s2 + $0x10] sm:$0xff] %v295_v15 }
 0x163   :  { %v894_v16 = vpop.f32.mrb[2].mxu0  ;;  %v901_v17 = vpop.f32.mrb[2].mxu1 }
 0x164   :  { %795 = vst [vmem:[%s1179_s2 + $0x28] sm:$0xf] %v894_v16  ;;  %797 = vst [vmem:[%s1179_s2 + $0x38] sm:$0xf] %v901_v17  ;;  %v376_v18 = vpop.f32.mrb[3].mxu0  ;;  %v457_v19 = vpop.f32.mrb[3].mxu1 }
 0x165   :  { %794 = vst [vmem:[%s1179_s2 + $0x20] sm:$0xff] %v376_v18  ;;  %796 = vst [vmem:[%s1179_s2 + $0x30] sm:$0xff] %v457_v19 }
 0x16b   :  { %v908_v20 = vpop.f32.mrb[4].mxu0  ;;  %v915_v21 = vpop.f32.mrb[4].mxu1 }
 0x16c   :  { %799 = vst [vmem:[%s1179_s2 + $0x48] sm:$0xf] %v908_v20  ;;  %801 = vst [vmem:[%s1179_s2 + $0x58] sm:$0xf] %v915_v21  ;;  %v538_v22 = vpop.f32.mrb[5].mxu0  ;;  %v619_v23 = vpop.f32.mrb[5].mxu1 }
 0x16d   :  { %798 = vst [vmem:[%s1179_s2 + $0x40] sm:$0xff] %v538_v22  ;;  %800 = vst [vmem:[%s1179_s2 + $0x50] sm:$0xff] %v619_v23 }
 0x173   :  { %v922_v24 = vpop.f32.mrb[6].mxu0  ;;  %v929_v25 = vpop.f32.mrb[6].mxu1 }
 0x174   :  { %803 = vst [vmem:[%s1179_s2 + $0x68] sm:$0xf] %v922_v24  ;;  %805 = vst [vmem:[%s1179_s2 + $0x78] sm:$0xf] %v929_v25  ;;  %v700_v26 = vpop.f32.mrb[7].mxu0  ;;  %v781_v27 = vpop.f32.mrb[7].mxu1 }
 0x175   :  { %802 = vst [vmem:[%s1179_s2 + $0x60] sm:$0xff] %v700_v26  ;;  %804 = vst [vmem:[%s1179_s2 + $0x70] sm:$0xff] %v781_v27 }

</bundles_post_ra>
